<compile_context>
chip_gen: v6e
topology: v6e:2x2x1
jax: 0.10.0
libtpu: 0.0.40
codegen_flags: <defaults>
</compile_context>

<pallas_src>
import math

import jax
import jax.numpy as jnp
from jax.experimental import pallas as pl
from jax.experimental.pallas import tpu as pltpu


def _expm1_neg(x):
    # expm1 for x <= 0: 4th-order Taylor near 0 (avoids exp(x)-1 cancellation),
    # exp(x)-1 elsewhere.  Accurate to ~1e-7 at the -0.125 blend point.
    p = x * (1.0 + x * (0.5 + x * (1.0 / 6.0 + x * (1.0 / 24.0))))
    return jnp.where(x > -0.125, p, jnp.exp(x) - 1.0)


def _make_kernel(adj_first: bool):
    def kernel(x_ref, adj_ref, w_ref, b_ref, o_ref):
        # x_ref   : (Bblk, m,  in_f)    VMEM
        # adj_ref : (Bblk, tm, m)       VMEM
        # w_ref   : (in_f, out_fp)      VMEM (out_fp padded to 128 multiple)
        # b_ref   : (1, out_fp)         VMEM
        # o_ref   : (Bblk, tm, out_fp)  VMEM
        bblk, tm, out_fp = o_ref.shape
        m = x_ref.shape[1]
        in_f = x_ref.shape[-1]

        x = x_ref[...]
        adj = adj_ref[...]
        w = w_ref[...]
        b = b_ref[...]

        if adj_first:
            # t = adj @ x : the m*m contraction only produces in_f columns.
            t = jnp.einsum("bnm,bmi->bni", adj, x,
                           preferred_element_type=jnp.float32)
            # Fold batch into sublanes: one (Bblk*tm, in_f) @ (in_f, out_fp).
            out2d = jnp.dot(t.reshape(bblk * tm, in_f), w,
                            preferred_element_type=jnp.float32)
        else:
            # support = x @ W first (cheaper when out_fp < in_f and m untiled).
            sup = jnp.dot(x.reshape(bblk * m, in_f), w,
                          preferred_element_type=jnp.float32)
            sup = sup.reshape(bblk, m, out_fp)
            out3d = jnp.einsum("bnm,bmo->bno", adj, sup,
                               preferred_element_type=jnp.float32)
            out2d = out3d.reshape(bblk * tm, out_fp)

        out2d = out2d + b  # (1, out_fp) broadcast over sublanes
        # ELU (alpha = 1.0), numerically stable negative branch.
        out2d = jnp.where(out2d > 0.0, out2d,
                          _expm1_neg(jnp.minimum(out2d, 0.0)))
        o_ref[...] = out2d.reshape(bblk, tm, out_fp).astype(o_ref.dtype)

    return kernel


def graph_conv_layer(x, adj, weight, bias):
    """x: [B, m, in_f], adj: [B, m, m], weight: [in_f, out_f], bias: [out_f]."""
    B, m, in_f = x.shape
    assert weight.shape[0] == in_f
    out_f = weight.shape[1]
    assert adj.shape == (B, m, m)

    itemsize = jnp.dtype(x.dtype).itemsize

    # Lane-dense output: pad out_features up to a multiple of 128 so the
    # output stores are unmasked; padded columns are zero and sliced off.
    out_fp = ((out_f + 127) // 128) * 128
    if out_fp != out_f:
        weight = jnp.pad(weight, ((0, 0), (0, out_fp - out_f)))
        bias = jnp.pad(bias, (0, out_fp - out_f))
    bias2d = bias.reshape(1, out_fp)

    # Batch folding: several batches per grid step so the weight matmul fills
    # the MXU sublanes and per-step pipeline overhead is amortized.
    bblk = min(B, max(1, 256 // m))
    while B % bblk != 0:
        bblk -= 1

    # Node (adj-row) tiling keeps the O(m^2) adj block bounded in VMEM
    # (v7x has only 64 MiB physical VMEM) and gives more parallel grid steps.
    if m % 128 == 0 and m > 256:
        tm = 256 if m % 256 == 0 else 128
        if bblk * tm * m * itemsize > (8 << 20):
            tm = 128
    else:
        tm = m  # small / non-128-aligned m: full-row block (last-two-dims rule)
    # TODO(synk): for very large m, additionally tile the adj contraction (k
    # axis) with an f32 VMEM accumulator + pl.when init/finalize.

    # Choose contraction order by total MACs per batch element, including the
    # support-recompute penalty when adj rows are tiled (m // tm tiles each
    # recompute the full x @ W in the x-first path).
    n_tiles = m // tm
    cost_adj_first = m * m * in_f + m * in_f * out_fp
    cost_x_first = n_tiles * m * in_f * out_fp + m * m * out_fp
    adj_first = cost_adj_first <= cost_x_first

    grid = (B // bblk, n_tiles)

    block_bytes = itemsize * (
        bblk * m * in_f          # x block
        + bblk * tm * m          # adj block
        + in_f * out_fp          # weight
        + out_fp                 # bias
        + bblk * tm * out_fp)    # out block
    vmem_limit = int(min(64 << 20, max(32 << 20, 3 * block_bytes)))

    out = pl.pallas_call(
        _make_kernel(adj_first),
        out_shape=jax.ShapeDtypeStruct((B, m, out_fp), x.dtype),
        grid_spec=pltpu.PrefetchScalarGridSpec(
            num_scalar_prefetch=0,
            grid=grid,
            in_specs=[
                pl.BlockSpec((bblk, m, in_f), lambda bi, ni: (bi, 0, 0)),
                pl.BlockSpec((bblk, tm, m), lambda bi, ni: (bi, ni, 0)),
                pl.BlockSpec((in_f, out_fp), lambda bi, ni: (0, 0)),
                pl.BlockSpec((1, out_fp), lambda bi, ni: (0, 0)),
            ],
            out_specs=pl.BlockSpec((bblk, tm, out_fp),
                                   lambda bi, ni: (bi, ni, 0)),
        ),
        compiler_params=pltpu.CompilerParams(
            dimension_semantics=("parallel", "parallel"),
            vmem_limit_bytes=vmem_limit,
        ),
    )(x, adj, weight, bias2d)

    if out_fp != out_f:
        out = out[..., :out_f]
    return out


def _reference(x, adj, weight, bias):
    support = jnp.einsum("bmi,io->bmo", x, weight)
    out = jnp.einsum("bnm,bmo->bno", adj, support) + bias
    return jnp.where(out > 0, out, jnp.expm1(out))


if __name__ == "__main__":
    # Small shapes consistent with the module's forward.
    B, m, in_features, out_features = 2, 16, 8, 32

    key = jax.random.PRNGKey(0)
    k_x, k_adj, k_w, k_b = jax.random.split(key, 4)

    x = jax.random.normal(k_x, (B, m, in_features), dtype=jnp.float32)
    adj = jax.random.uniform(k_adj, (B, m, m), dtype=jnp.float32)

    # Deterministic parameter init matching the PyTorch module's __init__:
    # xavier_uniform_ for weight, uniform(-1/sqrt(out), 1/sqrt(out)) for bias.
    xavier_bound = math.sqrt(6.0 / (in_features + out_features))
    weight = jax.random.uniform(
        k_w, (in_features, out_features), dtype=jnp.float32,
        minval=-xavier_bound, maxval=xavier_bound)
    bias_bound = 1.0 / math.sqrt(out_features)
    bias = jax.random.uniform(
        k_b, (out_features,), dtype=jnp.float32,
        minval=-bias_bound, maxval=bias_bound)

    out = jax.block_until_ready(graph_conv_layer(x, adj, weight, bias))
    ref = _reference(x, adj, weight, bias)

    assert out.shape == (B, m, out_features)
    max_err = float(jnp.max(jnp.abs(out - ref)))
    assert jnp.allclose(out, ref, atol=1e-4, rtol=1e-4), max_err

    print("KERNEL_OK")
</pallas_src>

<mosaic_0001>
module attributes {stable_mosaic.version = 11 : i64} {
  func.func @kernel(%arg0: i32, %arg1: i32, %arg2: memref<2x16x8xf32, #tpu.memory_space<vmem>>, %arg3: memref<2x16x16xf32, #tpu.memory_space<vmem>>, %arg4: memref<8x128xf32, #tpu.memory_space<vmem>>, %arg5: memref<1x128xf32, #tpu.memory_space<vmem>>, %arg6: memref<2x16x128xf32, #tpu.memory_space<vmem>>) attributes {dimension_semantics = [#tpu.dimension_semantics<parallel>, #tpu.dimension_semantics<parallel>], iteration_bounds = array<i64: 1, 1>, scalar_prefetch = 0 : i64, scratch_operands = 0 : i64, tpu.core_type = #tpu.core_type<tc>, window_params = [{transform_indices = @transform_0, window_bounds = array<i64: 2, 16, 8>}, {transform_indices = @transform_1, window_bounds = array<i64: 2, 16, 16>}, {pipeline_mode = #tpu.pipeline_mode<synchronous>, transform_indices = @transform_2, window_bounds = array<i64: 8, 128>}, {pipeline_mode = #tpu.pipeline_mode<synchronous>, transform_indices = @transform_3, window_bounds = array<i64: 1, 128>}, {transform_indices = @transform_4, window_bounds = array<i64: 2, 16, 128>}]} {
    %c0 = arith.constant 0 : index
    %c0_0 = arith.constant 0 : index
    %c0_1 = arith.constant 0 : index
    %0 = vector.load %arg2[%c0, %c0_0, %c0_1] : memref<2x16x8xf32, #tpu.memory_space<vmem>>, vector<2x16x8xf32>
    %c0_2 = arith.constant 0 : index
    %c0_3 = arith.constant 0 : index
    %c0_4 = arith.constant 0 : index
    %1 = vector.load %arg3[%c0_2, %c0_3, %c0_4] : memref<2x16x16xf32, #tpu.memory_space<vmem>>, vector<2x16x16xf32>
    %c0_5 = arith.constant 0 : index
    %c0_6 = arith.constant 0 : index
    %2 = vector.load %arg4[%c0_5, %c0_6] : memref<8x128xf32, #tpu.memory_space<vmem>>, vector<8x128xf32>
    %c0_7 = arith.constant 0 : index
    %c0_8 = arith.constant 0 : index
    %3 = vector.load %arg5[%c0_7, %c0_8] : memref<1x128xf32, #tpu.memory_space<vmem>>, vector<1x128xf32>
    "tpu.trace_start"() <{level = 10 : i32, message = "bnm,bmi->bni"}> : () -> ()
    %cst = arith.constant dense<0.000000e+00> : vector<2x16x8xf32>
    %4 = tpu.matmul %1, %0, %cst {dimension_numbers = #tpu.dot_dimension_numbers<[2], [1], [1], [2], [0, 0, 0, 1, 1, 2], [0], [0]>} : vector<2x16x16xf32>, vector<2x16x8xf32>, vector<2x16x8xf32> -> vector<2x16x8xf32>
    "tpu.trace_stop"() : () -> ()
    %5 = vector.shape_cast %4 : vector<2x16x8xf32> to vector<32x8xf32>
    %cst_9 = arith.constant dense<0.000000e+00> : vector<32x128xf32>
    %6 = tpu.matmul %5, %2, %cst_9 {dimension_numbers = #tpu.dot_dimension_numbers<[1], [0], [0], [1], [0, 0, 1, 1], [], []>} : vector<32x8xf32>, vector<8x128xf32>, vector<32x128xf32> -> vector<32x128xf32>
    %7 = vector.broadcast %3 : vector<1x128xf32> to vector<32x128xf32>
    %8 = arith.addf %6, %7 : vector<32x128xf32>
    %cst_10 = arith.constant 0.000000e+00 : f32
    %9 = vector.broadcast %cst_10 : f32 to vector<32x128xf32>
    %10 = arith.cmpf ogt, %8, %9 : vector<32x128xf32>
    %cst_11 = arith.constant 0.000000e+00 : f32
    %11 = vector.broadcast %cst_11 : f32 to vector<32x128xf32>
    %12 = arith.minimumf %8, %11 : vector<32x128xf32>
    %cst_12 = arith.constant 0.0416666679 : f32
    %13 = vector.broadcast %cst_12 : f32 to vector<32x128xf32>
    %14 = arith.mulf %12, %13 : vector<32x128xf32>
    %cst_13 = arith.constant 0.166666672 : f32
    %15 = vector.broadcast %cst_13 : f32 to vector<32x128xf32>
    %16 = arith.addf %15, %14 : vector<32x128xf32>
    %17 = arith.mulf %12, %16 : vector<32x128xf32>
    %cst_14 = arith.constant 5.000000e-01 : f32
    %18 = vector.broadcast %cst_14 : f32 to vector<32x128xf32>
    %19 = arith.addf %18, %17 : vector<32x128xf32>
    %20 = arith.mulf %12, %19 : vector<32x128xf32>
    %cst_15 = arith.constant 1.000000e+00 : f32
    %21 = vector.broadcast %cst_15 : f32 to vector<32x128xf32>
    %22 = arith.addf %21, %20 : vector<32x128xf32>
    %23 = arith.mulf %12, %22 : vector<32x128xf32>
    %cst_16 = arith.constant -1.250000e-01 : f32
    %24 = vector.broadcast %cst_16 : f32 to vector<32x128xf32>
    %25 = arith.cmpf ogt, %12, %24 : vector<32x128xf32>
    %26 = math.exp %12 : vector<32x128xf32>
    %cst_17 = arith.constant 1.000000e+00 : f32
    %27 = vector.broadcast %cst_17 : f32 to vector<32x128xf32>
    %28 = arith.subf %26, %27 : vector<32x128xf32>
    %29 = arith.select %25, %23, %28 : vector<32x128xi1>, vector<32x128xf32>
    %30 = arith.select %10, %8, %29 : vector<32x128xi1>, vector<32x128xf32>
    %31 = vector.shape_cast %30 : vector<32x128xf32> to vector<2x16x128xf32>
    %c0_18 = arith.constant 0 : index
    %c0_19 = arith.constant 0 : index
    %c0_20 = arith.constant 0 : index
    %32 = vector.load %arg6[%c0_18, %c0_19, %c0_20] : memref<2x16x128xf32, #tpu.memory_space<vmem>>, vector<2x16x128xf32>
    tpu.vector_store %arg6[%c0_18, %c0_19, %c0_20], %31 {strides = array<i32>} : memref<2x16x128xf32, #tpu.memory_space<vmem>>, vector<2x16x128xf32>,
    return
  }
  func.func @transform_0(%arg0: i32, %arg1: i32) -> (i32, i32, i32) {
    %c0_i32 = arith.constant 0 : i32
    %c0_i32_0 = arith.constant 0 : i32
    %c0_i32_1 = arith.constant 0 : i32
    return %arg0, %c0_i32, %c0_i32_0 : i32, i32, i32
  }
  func.func @transform_1(%arg0: i32, %arg1: i32) -> (i32, i32, i32) {
    %c0_i32 = arith.constant 0 : i32
    %c0_i32_0 = arith.constant 0 : i32
    return %arg0, %arg1, %c0_i32 : i32, i32, i32
  }
  func.func @transform_2(%arg0: i32, %arg1: i32) -> (i32, i32) {
    %c0_i32 = arith.constant 0 : i32
    %c0_i32_0 = arith.constant 0 : i32
    %c0_i32_1 = arith.constant 0 : i32
    return %c0_i32, %c0_i32_0 : i32, i32
  }
  func.func @transform_3(%arg0: i32, %arg1: i32) -> (i32, i32) {
    %c0_i32 = arith.constant 0 : i32
    %c0_i32_0 = arith.constant 0 : i32
    %c0_i32_1 = arith.constant 0 : i32
    return %c0_i32, %c0_i32_0 : i32, i32
  }
  func.func @transform_4(%arg0: i32, %arg1: i32) -> (i32, i32, i32) {
    %c0_i32 = arith.constant 0 : i32
    %c0_i32_0 = arith.constant 0 : i32
    return %arg0, %arg1, %c0_i32 : i32, i32, i32
  }
}

</mosaic_0001>

<bundles_post_ra>
// kernel: tpu_custom_call.1
= control target key start
LH: loop header
LB: loop body
LE: loop exit
PB: predicated region body
PF: predicated region fallthrough
CT: control target
= control target key end

     0   :  { %vm28_vm0 = vcmask 130048   ;;  %s531_s0 = inlined_call_operand.vmem [shape: f32[2,16,8], index: 0, kind: input, shape index: {}]   ;;  %s532_s1 = inlined_call_operand.vmem [shape: f32[2,16,16], index: 1, kind: input, shape index: {}]   ;;  %s533_s2 = inlined_call_operand.vmem [shape: f32[8,128], index: 2, kind: input, shape index: {}]   ;;  %s534_s3 = inlined_call_operand.vmem [shape: f32[1,128], index: 3, kind: input, shape index: {}]   ;;  %s535_s4 = inlined_call_operand.hbm [shape: f32[2,16,128], index: 4, kind: output, shape index: {}]  }
   0x1   :  { %v19_v0 = vld [vmem:[%s531_s0 + $0x8] sm:$0xff]  ;;  %v18_v1 = vld [vmem:[%s531_s0] sm:$0xff]  ;;  %v21_v4 = vld [vmem:[%s531_s0 + $0x18] sm:$0xff] }
   0x2   :  { %v22_v2 = vld [vmem:[%s532_s1] sm:$0xff]  ;;  %401 = vmatprep.subr.mxu1 %v19_v0  ;;  %v23_v3 = vld [vmem:[%s532_s1 + $0x8] sm:$0xff] }
   0x3   :  { %405 = vmatprep.mubr.msk.f32.mxu1 %vm28_vm0, %v22_v2  ;;  %402 = vmatpush3.msra.mxu1 %v19_v0 }
   0x4   :  { %9 = vsyncpa [#allocation3], 0  ;;  %403 = vmatprep.subr.mxu1 %v18_v1  ;;  %v24_v5 = vld [vmem:[%s532_s1 + $0x10] sm:$0xff]  ;;  %v25_v7 = vld [vmem:[%s532_s1 + $0x18] sm:$0xff]  ;;  %vm197_vm1 = vcmask 64512  }
   0x5   :  { %404 = vmatpush3.msra.mxu1 %v18_v1  ;;  %v20_v6 = vld [vmem:[%s531_s0 + $0x10] sm:$0xff]  ;;  %v26_v8 = vld [vmem:[%s533_s2] sm:$0xff]  ;;  %s456_s2 = smov [#allocation2]  }
   0x6   :  { %406 = vmatmul.mubr.msk.f32.vlgmr.msra.gmra.mxu1 %vm28_vm0, %v23_v3  ;;  %408 = vmatprep.subr.mxu1 %v21_v4  ;;  %v379_v13 = vld [vmem:[%s534_s3] ss:$0 sm:$0xff]  ;;  %s364_s3 = sshll.u32 %s456_s2, 4  ;;  %s365_s3 = int_to_ptr.vmem [resolvable:$true] %s364_s3 }
   0x7   :  { %409 = vmatpush3.msra.mxu1 %v21_v4  ;;  %412 = vmatprep.mubr.msk.f32.mxu1 %vm28_vm0, %v24_v5  ;;  %s434_s7 = scalar_lea.vmem %s365_s3, 512  ;;  %p439_p1 = scmp.lt.s32.totalorder %s365_s3, %s365_s3 }
   0x8   :  { %410 = vmatprep.subr.mxu1 %v20_v6  ;;  %415 = vmatprep.subr.mxu0 %v26_v8  ;;  %p435_p0 = scmp.ne.s32.totalorder %s365_s3, %s434_s7  ;;  %p440_p2 = scmp.lt.s32.totalorder %s434_s7, %s434_s7 }
   0x9   :  { %411 = vmatpush3.msra.mxu1 %v20_v6  ;;  %416 = vmatpush3.msra.mxu0 %v26_v8 }
   0xa   :  { %413 = vmatmul.mubr.msk.f32.vlgmr.msra.gmra.mxu1 %vm28_vm0, %v25_v7  ;;  %p441_p3 = por %p440_p2, %p439_p1 }
   0xc   :  { %p442_p4 = pnand %p441_p3, %p435_p0 }
  0xc6   :  { %v407_v9 = vpop.f32.mrf.mxu1 }
  0xc8   :  { %v101_v10 = vpop.f32.mrf.mxu1 }
  0xc9   :  { %417 = vmatprep.mubr.msk.f32.mxu0 %vm197_vm1, %v101_v10 }
  0xca   :  { %v414_v11 = vpop.f32.mrf.mxu1  ;;  %418 = vmatmul.mubr.msk.f32.vlgmr.msra.gmra.mxu0 %vm197_vm1, %v407_v9 }
  0xcc   :  { %v182_v12 = vpop.f32.mrf.mxu1 }
  0xcd   :  { %420 = vmatprep.mubr.msk.f32.mxu0 %vm197_vm1, %v182_v12 }
  0xce   :  { %421 = vmatmul.mubr.msk.f32.gmra.mxu0 %vm197_vm1, %v414_v11 }
 0x18a   :  { %v419_v14 = vpop.f32.mrf.mxu0 }
 0x18b   :  { %v282_v15 = vadd.f32 %v419_v14, %v379_v13 }
 0x18c   :  { %v276_v16 = vpop.f32.mrf.mxu0 }
 0x18d   :  { %v300_v17 = vmin.f32 %v282_v15, 0.0  ;;  %v277_v18 = vadd.f32 %v379_v13, %v276_v16  ;;  %vm296_vm3 = vcmp.gt.f32.partialorder %v282_v15, 0.0 }
 0x18e   :  { %v422_v19 = vpop.f32.mrf.mxu0 }
 0x18f   :  { %v304_v20 = vmul.f32 0.041666668, %v300_v17  ;;  %v337_v21 = vmul.f32 1.442695, %v300_v17  ;;  %v299_v22 = vmin.f32 %v277_v18, 0.0  ;;  %v518_v23 = vadd.f32 %v422_v19, %v379_v13 }
 0x190   :  { %v286_v24 = vpop.f32.mrf.mxu0  ;;  %vm332_vm2 = vcmp.gt.f32.partialorder %v300_v17, -0.125  ;;  %vm295_vm5 = vcmp.gt.f32.partialorder %v277_v18, 0.0 }
 0x191   :  { %v308_v25 = vadd.f32 0.16666667, %v304_v20  ;;  %426 = vpow2.f32 %v337_v21  ;;  %v520_v26 = vadd.f32 %v379_v13, %v286_v24  ;;  %v303_v27 = vmul.f32 0.041666668, %v299_v22 }
 0x192   :  { %v335_v28 = vmul.f32 1.442695, %v299_v22  ;;  %v302_v30 = vmin.f32 %v518_v23, 0.0  ;;  %vm331_vm4 = vcmp.gt.f32.partialorder %v299_v22, -0.125  ;;  %vm298_vm7 = vcmp.gt.f32.partialorder %v518_v23, 0.0 }
 0x193   :  { %v312_v29 = vmul.f32 %v308_v25, %v300_v17  ;;  %v301_v31 = vmin.f32 %v520_v26, 0.0  ;;  %v307_v32 = vadd.f32 0.16666667, %v303_v27  ;;  %vm297_vm9 = vcmp.gt.f32.partialorder %v520_v26, 0.0 }
 0x194   :  { %428 = vpow2.f32 %v335_v28  ;;  %v306_v34 = vmul.f32 0.041666668, %v302_v30  ;;  %v341_v35 = vmul.f32 1.442695, %v302_v30  ;;  %vm334_vm6 = vcmp.gt.f32.partialorder %v302_v30, -0.125 }
 0x195   :  { %v316_v33 = vadd.f32 0.5, %v312_v29  ;;  %v311_v36 = vmul.f32 %v307_v32, %v299_v22  ;;  %v305_v37 = vmul.f32 0.041666668, %v301_v31  ;;  %v339_v38 = vmul.f32 1.442695, %v301_v31 }
 0x196   :  { %v310_v40 = vadd.f32 0.16666667, %v306_v34  ;;  %430 = vpow2.f32 %v341_v35  ;;  %vm333_vm8 = vcmp.gt.f32.partialorder %v301_v31, -0.125 }
 0x197   :  { %v320_v39 = vmul.f32 %v316_v33, %v300_v17  ;;  %v315_v41 = vadd.f32 0.5, %v311_v36  ;;  %v309_v42 = vadd.f32 0.16666667, %v305_v37  ;;  %432 = vpow2.f32 %v339_v38 }
 0x198   :  { %v314_v43 = vmul.f32 %v310_v40, %v302_v30 }
 0x199   :  { %v319_v44 = vmul.f32 %v315_v41, %v299_v22  ;;  %v313_v45 = vmul.f32 %v309_v42, %v301_v31  ;;  %v324_v46 = vadd.f32 1.0, %v320_v39 }
 0x19a   :  { %v318_v47 = vadd.f32 0.5, %v314_v43 }
 0x19b   :  { %v317_v48 = vadd.f32 0.5, %v313_v45  ;;  %v323_v51 = vadd.f32 1.0, %v319_v44  ;;  %v328_v53 = vmul.f32 %v324_v46, %v300_v17 }
 0x19c   :  { %v322_v49 = vmul.f32 %v318_v47, %v302_v30 }
 0x19d   :  { %v321_v52 = vmul.f32 %v317_v48, %v301_v31  ;;  %v327_v59 = vmul.f32 %v323_v51, %v299_v22 }
 0x19e   :  { %v427_v50 = vpop.eup %426  ;;  %v326_v57 = vadd.f32 1.0, %v322_v49 }
 0x19f   :  { %v385_v54 = vadd.f32 -1.0, %v427_v50  ;;  %v325_v61 = vadd.f32 1.0, %v321_v52 }
 0x1a0   :  { %v330_v2 = vmul.f32 %v326_v57, %v302_v30 }
 0x1a1   :  { %v429_v55 = vpop.eup %428  ;;  %v348_v56 = vsel %vm332_vm2, %v328_v53, %v385_v54  ;;  %v329_v4 = vmul.f32 %v325_v61, %v301_v31 }
 0x1a2   :  { %v352_v58 = vsel %vm296_vm3, %v282_v15, %v348_v56  ;;  %v384_v60 = vadd.f32 -1.0, %v429_v55 }
 0x1a3   :  { %356 = vst [vmem:[#allocation2 + $0x8] sm:$0xff] %v352_v58  ;;  %v431_v62 = vpop.eup %430 }
 0x1a4   :  { %v347_v63 = vsel %vm331_vm4, %v327_v59, %v384_v60  ;;  %v433_v0 = vpop.eup %432  ;;  %v387_v3 = vadd.f32 -1.0, %v431_v62 }
 0x1a5   :  { %v351_v1 = vsel %vm295_vm5, %v277_v18, %v347_v63  ;;  %v386_v5 = vadd.f32 -1.0, %v433_v0 }
 0x1a6   :  { %355 = vst [vmem:[#allocation2] sm:$0xff] %v351_v1  ;;  %v350_v6 = vsel %vm334_vm6, %v330_v2, %v387_v3 }
 0x1a7   :  { %v354_v7 = vsel %vm298_vm7, %v518_v23, %v350_v6  ;;  %v349_v8 = vsel %vm333_vm8, %v329_v4, %v386_v5 }
 0x1a8   :  { %358 = vst [vmem:[#allocation2 + $0x18] sm:$0xff] %v354_v7  ;;  %v353_v9 = vsel %vm297_vm9, %v520_v26, %v349_v8 }
 0x1a9   :  { %357 = vst [vmem:[#allocation2 + $0x10] sm:$0xff] %v353_v9 }
 0x1aa   :  { %445 = shalt.err (!%p442_p4)
}
 0x1ab   :  { %s457_s8 = smov 128   ;;  %s458_s9 = smov 8  }
 0x1ac   :  { %370 = dma.vmem_to_hbm [thread:$0]  %s365_s3, 512, %s535_s4, [#allocation3], %s457_s8, %s457_s8, %s458_s9  }
 0x1ad   :  { %454 = dma.done.wait [#allocation3], 512  }
 0x1ae   :  { %455 = vsyncadd [#allocation3], 4294966784 }
 0x1af   :  { %374 = vsyncpa [#allocation3], 1 }

</bundles_post_ra>
